<compile_context>
chip_gen: v7x
topology: tpu7x:2x2x1
jax: 0.10.0
libtpu: 0.0.40
codegen_flags: <defaults>
</compile_context>

<pallas_src>
import jax
import jax.numpy as jnp
from jax import lax
from jax.experimental import pallas as pl
from jax.experimental.pallas import tpu as pltpu


def lstm_cls_kernel(x_ref, wih_ref, whh_ref, b_ref, wlab_ref, blab_ref,
                    out_ref, gx_sc, h_sc, c_sc):
    """Full LSTM recurrence + final projection + log_softmax.

    x_ref    : (T*B, E)    embedded sequence, flattened over time (compute dtype)
    wih_ref  : (E, 4H)     input->gates weights (transposed, gate order i,f,g,o)
    whh_ref  : (H, 4H)     hidden->gates weights (transposed)
    b_ref    : (1, 4H)     combined bias (b_ih + b_hh), f32
    wlab_ref : (H, L)      hidden->label weights (transposed)
    blab_ref : (1, L)      label bias, f32
    out_ref  : (B, L)      log-probabilities (f32)
    gx_sc    : (T*B, 4H)   VMEM scratch: precomputed x@W_ih + b (f32)
    h_sc,c_sc: (B, H)      VMEM scratch carrying the recurrent state (f32)
    """
    B, H = h_sc.shape
    TB = x_ref.shape[0]
    T = TB // B

    # (1) Hoist the input-to-hidden matmul + bias out of the recurrence:
    #     one well-fed MXU matmul instead of T tiny K=32 ones.
    #     Scratch cost is T*B*4H*4 bytes -- trivial in VMEM.
    gx_sc[...] = (jnp.dot(x_ref[...], wih_ref[...],
                          preferred_element_type=jnp.float32)
                  + b_ref[...])

    # self.hidden = init_hidden() -> zeros
    h_sc[...] = jnp.zeros_like(h_sc)
    c_sc[...] = jnp.zeros_like(c_sc)

    def step(t, carry):
        row = pl.multiple_of(t * B, B)                    # sublane-aligned start
        # Per-step critical path: one (B,H)@(H,4H) MXU matmul + elementwise.
        gates = gx_sc[pl.ds(row, B), :] + jnp.dot(
            h_sc[...].astype(whh_ref.dtype), whh_ref[...],
            preferred_element_type=jnp.float32)           # (B, 4H) f32
        # (3) One full-width sigmoid over the whole (B,4H) tile (single EUP
        #     push); slice i/f/o out of it.  tanh only for the g gate.
        s = jax.nn.sigmoid(gates)
        i = s[:, 0 * H:1 * H]
        f = s[:, 1 * H:2 * H]
        o = s[:, 3 * H:4 * H]
        g = jnp.tanh(gates[:, 2 * H:3 * H])
        c_new = f * c_sc[...] + i * g
        h_sc[...] = o * jnp.tanh(c_new)
        c_sc[...] = c_new
        return carry

    # (2) Fully unrolled recurrence (T is static & small).
    lax.fori_loop(0, T, step, 0, unroll=True)

    # y = hidden2label(lstm_out[-1]) ; lstm_out[-1] == final hidden state h_T
    y = (jnp.dot(h_sc[...].astype(wlab_ref.dtype), wlab_ref[...],
                 preferred_element_type=jnp.float32)
         + blab_ref[...])                                 # (B, L)

    # log_softmax over the last dim (F.log_softmax default dim=1 for 2D input).
    # Note: L < 128 lanes => masked store; negligible at this size.
    y_max = jnp.max(y, axis=-1, keepdims=True)
    y_shift = y - y_max
    lse = jnp.log(jnp.sum(jnp.exp(y_shift), axis=-1, keepdims=True))
    out_ref[...] = y_shift - lse


def lstm_classification_forward(sentence, params, compute_dtype=jnp.float32):
    """sentence: (T, B) int32 token ids. Returns (B, label_size) log-probs.

    compute_dtype controls the matmul-operand dtype (use jnp.bfloat16 on
    v6e/v7x at scale); accumulation and state stay in f32.
    """
    emb_table = params["embedding"]          # (V, E)
    w_ih = params["w_ih"]                    # (4H, E)  PyTorch layout
    w_hh = params["w_hh"]                    # (4H, H)
    b_ih = params["b_ih"]                    # (4H,)
    b_hh = params["b_hh"]                    # (4H,)
    w_lab = params["w_label"]                # (L, H)
    b_lab = params["b_label"]                # (L,)

    T, B = sentence.shape
    H = w_hh.shape[1]
    E = w_ih.shape[1]
    L = w_lab.shape[0]

    # Embedding lookup (gather) stays in plain JAX glue at these sizes.
    # TODO(synk): at large T/vocab, fold the gather into the kernel via
    # PrefetchScalarGridSpec row gather instead of materializing (T*B, E).
    x = jnp.take(emb_table, sentence, axis=0)                  # (T, B, E) f32
    x_flat = x.reshape(T * B, E).astype(compute_dtype)         # (T*B, E)

    wih_t = jnp.transpose(w_ih).astype(compute_dtype)          # (E, 4H)
    whh_t = jnp.transpose(w_hh).astype(compute_dtype)          # (H, 4H)
    b = (b_ih + b_hh).reshape(1, 4 * H).astype(jnp.float32)
    wlab_t = jnp.transpose(w_lab).astype(compute_dtype)        # (H, L)
    blab = b_lab.reshape(1, L).astype(jnp.float32)

    vmem = pl.BlockSpec(memory_space=pltpu.MemorySpace.VMEM)
    out = pl.pallas_call(
        lstm_cls_kernel,
        out_shape=jax.ShapeDtypeStruct((B, L), jnp.float32),
        in_specs=[vmem] * 6,
        out_specs=vmem,
        scratch_shapes=[pltpu.VMEM((T * B, 4 * H), jnp.float32),  # gx (hoisted)
                        pltpu.VMEM((B, H), jnp.float32),          # h state
                        pltpu.VMEM((B, H), jnp.float32)],         # c state
    )(x_flat, wih_t, whh_t, b, wlab_t, blab)
    return out


def _reference_forward(sentence, params):
    """Pure-JAX reference matching PyTorch semantics, for sanity checking."""
    x = jnp.take(params["embedding"], sentence, axis=0).astype(jnp.float32)
    H = params["w_hh"].shape[1]
    T, B, _ = x.shape
    wih_t = params["w_ih"].T
    whh_t = params["w_hh"].T
    b = params["b_ih"] + params["b_hh"]
    h = jnp.zeros((B, H), jnp.float32)
    c = jnp.zeros((B, H), jnp.float32)
    for t in range(T):
        gates = x[t] @ wih_t + h @ whh_t + b
        i = jax.nn.sigmoid(gates[:, 0 * H:1 * H])
        f = jax.nn.sigmoid(gates[:, 1 * H:2 * H])
        g = jnp.tanh(gates[:, 2 * H:3 * H])
        o = jax.nn.sigmoid(gates[:, 3 * H:4 * H])
        c = f * c + i * g
        h = o * jnp.tanh(c)
    y = h @ params["w_label"].T + params["b_label"]
    return jax.nn.log_softmax(y, axis=-1)


def init_params(key, vocab_size, embedding_dim, hidden_dim, label_size):
    """Deterministic parameter init mirroring the module's __init__."""
    k_emb, k_ih, k_hh, k_lw, k_lb = jax.random.split(key, 5)

    def xavier_normal(k, shape):
        fan_out, fan_in = shape
        std = (2.0 / (fan_in + fan_out)) ** 0.5
        return std * jax.random.normal(k, shape, dtype=jnp.float32)

    H4 = 4 * hidden_dim
    lin_bound = 1.0 / (hidden_dim ** 0.5)
    return {
        # nn.Embedding default: N(0, 1)
        "embedding": jax.random.normal(
            k_emb, (vocab_size, embedding_dim), dtype=jnp.float32),
        # init_weights(): xavier_normal_ on LSTM weights, zeros on biases
        "w_ih": xavier_normal(k_ih, (H4, embedding_dim)),
        "w_hh": xavier_normal(k_hh, (H4, hidden_dim)),
        "b_ih": jnp.zeros((H4,), jnp.float32),
        "b_hh": jnp.zeros((H4,), jnp.float32),
        # nn.Linear default: U(-1/sqrt(in), 1/sqrt(in))
        "w_label": jax.random.uniform(
            k_lw, (label_size, hidden_dim), jnp.float32,
            minval=-lin_bound, maxval=lin_bound),
        "b_label": jax.random.uniform(
            k_lb, (label_size,), jnp.float32,
            minval=-lin_bound, maxval=lin_bound),
    }


if __name__ == "__main__":
    EMBEDDING_DIM = 32
    HIDDEN_DIM = 32
    VOCAB_SIZE = 50
    LABEL_SIZE = 8
    BATCH_SIZE = 8
    SEQ_LEN = 8

    key = jax.random.PRNGKey(0)
    k_params, k_tokens = jax.random.split(key)
    params = init_params(k_params, VOCAB_SIZE, EMBEDDING_DIM,
                         HIDDEN_DIM, LABEL_SIZE)
    sentence = jax.random.randint(
        k_tokens, (SEQ_LEN, BATCH_SIZE), 0, VOCAB_SIZE, dtype=jnp.int32)

    ref = _reference_forward(sentence, params)

    # f32 path: bit-for-bit semantics of the PyTorch module.
    log_probs = lstm_classification_forward(sentence, params)
    log_probs = jax.block_until_ready(log_probs)
    assert log_probs.shape == (BATCH_SIZE, LABEL_SIZE)
    assert jnp.allclose(log_probs, ref, atol=1e-5, rtol=1e-5)

    # bf16 matmul-operand path (recommended default on v6e/v7x at scale).
    log_probs_bf16 = lstm_classification_forward(
        sentence, params, compute_dtype=jnp.bfloat16)
    log_probs_bf16 = jax.block_until_ready(log_probs_bf16)
    assert jnp.all(jnp.isfinite(log_probs_bf16))
    assert jnp.allclose(log_probs_bf16, ref, atol=5e-2, rtol=5e-2)

    print("KERNEL_OK")
</pallas_src>

<mosaic_0001>
module attributes {stable_mosaic.version = 11 : i64} {
  func.func @lstm_cls_kernel(%arg0: memref<64x32xf32, #tpu.memory_space<vmem>>, %arg1: memref<32x128xf32, #tpu.memory_space<vmem>>, %arg2: memref<32x128xf32, #tpu.memory_space<vmem>>, %arg3: memref<1x128xf32, #tpu.memory_space<vmem>>, %arg4: memref<32x8xf32, #tpu.memory_space<vmem>>, %arg5: memref<1x8xf32, #tpu.memory_space<vmem>>, %arg6: memref<8x8xf32, #tpu.memory_space<vmem>>, %arg7: memref<64x128xf32, #tpu.memory_space<vmem>>, %arg8: memref<8x32xf32, #tpu.memory_space<vmem>>, %arg9: memref<8x32xf32, #tpu.memory_space<vmem>>) attributes {dimension_semantics = [], scalar_prefetch = 0 : i64, scratch_operands = 3 : i64, tpu.core_type = #tpu.core_type<tc>} {
    %c0 = arith.constant 0 : index
    %c0_0 = arith.constant 0 : index
    %0 = vector.load %arg0[%c0, %c0_0] : memref<64x32xf32, #tpu.memory_space<vmem>>, vector<64x32xf32>
    %c0_1 = arith.constant 0 : index
    %c0_2 = arith.constant 0 : index
    %1 = vector.load %arg1[%c0_1, %c0_2] : memref<32x128xf32, #tpu.memory_space<vmem>>, vector<32x128xf32>
    %cst = arith.constant dense<0.000000e+00> : vector<64x128xf32>
    %2 = tpu.matmul %0, %1, %cst {dimension_numbers = #tpu.dot_dimension_numbers<[1], [0], [0], [1], [0, 0, 1, 1], [], []>} : vector<64x32xf32>, vector<32x128xf32>, vector<64x128xf32> -> vector<64x128xf32>
    %c0_3 = arith.constant 0 : index
    %c0_4 = arith.constant 0 : index
    %3 = vector.load %arg3[%c0_3, %c0_4] : memref<1x128xf32, #tpu.memory_space<vmem>>, vector<1x128xf32>
    %4 = vector.broadcast %3 : vector<1x128xf32> to vector<64x128xf32>
    %5 = arith.addf %2, %4 : vector<64x128xf32>
    %c0_5 = arith.constant 0 : index
    %c0_6 = arith.constant 0 : index
    %6 = vector.load %arg7[%c0_5, %c0_6] : memref<64x128xf32, #tpu.memory_space<vmem>>, vector<64x128xf32>
    tpu.vector_store %arg7[%c0_5, %c0_6], %5 {strides = array<i32>} : memref<64x128xf32, #tpu.memory_space<vmem>>, vector<64x128xf32>,
    %cst_7 = arith.constant 0.000000e+00 : f32
    %7 = vector.broadcast %cst_7 : f32 to vector<8x32xf32>
    %c0_8 = arith.constant 0 : index
    %c0_9 = arith.constant 0 : index
    %8 = vector.load %arg8[%c0_8, %c0_9] : memref<8x32xf32, #tpu.memory_space<vmem>>, vector<8x32xf32>
    tpu.vector_store %arg8[%c0_8, %c0_9], %7 {strides = array<i32>} : memref<8x32xf32, #tpu.memory_space<vmem>>, vector<8x32xf32>,
    %cst_10 = arith.constant 0.000000e+00 : f32
    %9 = vector.broadcast %cst_10 : f32 to vector<8x32xf32>
    %c0_11 = arith.constant 0 : index
    %c0_12 = arith.constant 0 : index
    %10 = vector.load %arg9[%c0_11, %c0_12] : memref<8x32xf32, #tpu.memory_space<vmem>>, vector<8x32xf32>
    tpu.vector_store %arg9[%c0_11, %c0_12], %9 {strides = array<i32>} : memref<8x32xf32, #tpu.memory_space<vmem>>, vector<8x32xf32>,
    %c0_i32 = arith.constant 0 : i32
    %c8_i32 = arith.constant 8 : i32
    %11 = arith.muli %c0_i32, %c8_i32 : i32
    %12 = tpu.assume_multiple %11, 8 : i32
    %13 = arith.index_cast %12 : i32 to index
    %c0_13 = arith.constant 0 : index
    %14 = vector.load %arg7[%13, %c0_13] : memref<64x128xf32, #tpu.memory_space<vmem>>, vector<8x128xf32>
    %c0_14 = arith.constant 0 : index
    %c0_15 = arith.constant 0 : index
    %15 = vector.load %arg8[%c0_14, %c0_15] : memref<8x32xf32, #tpu.memory_space<vmem>>, vector<8x32xf32>
    %c0_16 = arith.constant 0 : index
    %c0_17 = arith.constant 0 : index
    %16 = vector.load %arg2[%c0_16, %c0_17] : memref<32x128xf32, #tpu.memory_space<vmem>>, vector<32x128xf32>
    %cst_18 = arith.constant dense<0.000000e+00> : vector<8x128xf32>
    %17 = tpu.matmul %15, %16, %cst_18 {dimension_numbers = #tpu.dot_dimension_numbers<[1], [0], [0], [1], [0, 0, 1, 1], [], []>} : vector<8x32xf32>, vector<32x128xf32>, vector<8x128xf32> -> vector<8x128xf32>
    %18 = arith.addf %14, %17 : vector<8x128xf32>
    %19 = arith.negf %18 : vector<8x128xf32>
    %20 = math.exp %19 : vector<8x128xf32>
    %cst_19 = arith.constant 1.000000e+00 : f32
    %21 = vector.broadcast %cst_19 : f32 to vector<8x128xf32>
    %22 = arith.addf %21, %20 : vector<8x128xf32>
    %23 = arith.divf %21, %22 : vector<8x128xf32>
    %24 = vector.extract_strided_slice %23 {offsets = [0, 0], sizes = [8, 32], strides = [1, 1]} : vector<8x128xf32> to vector<8x32xf32>
    %25 = vector.extract_strided_slice %23 {offsets = [0, 32], sizes = [8, 32], strides = [1, 1]} : vector<8x128xf32> to vector<8x32xf32>
    %26 = vector.extract_strided_slice %23 {offsets = [0, 96], sizes = [8, 32], strides = [1, 1]} : vector<8x128xf32> to vector<8x32xf32>
    %27 = vector.extract_strided_slice %18 {offsets = [0, 64], sizes = [8, 32], strides = [1, 1]} : vector<8x128xf32> to vector<8x32xf32>
    %28 = math.tanh %27 : vector<8x32xf32>
    %c0_20 = arith.constant 0 : index
    %c0_21 = arith.constant 0 : index
    %29 = vector.load %arg9[%c0_20, %c0_21] : memref<8x32xf32, #tpu.memory_space<vmem>>, vector<8x32xf32>
    %30 = arith.mulf %25, %29 : vector<8x32xf32>
    %31 = arith.mulf %24, %28 : vector<8x32xf32>
    %32 = arith.addf %30, %31 : vector<8x32xf32>
    %33 = math.tanh %32 : vector<8x32xf32>
    %34 = arith.mulf %26, %33 : vector<8x32xf32>
    %c0_22 = arith.constant 0 : index
    %c0_23 = arith.constant 0 : index
    %35 = vector.load %arg8[%c0_22, %c0_23] : memref<8x32xf32, #tpu.memory_space<vmem>>, vector<8x32xf32>
    tpu.vector_store %arg8[%c0_22, %c0_23], %34 {strides = array<i32>} : memref<8x32xf32, #tpu.memory_space<vmem>>, vector<8x32xf32>,
    %c0_24 = arith.constant 0 : index
    %c0_25 = arith.constant 0 : index
    %36 = vector.load %arg9[%c0_24, %c0_25] : memref<8x32xf32, #tpu.memory_space<vmem>>, vector<8x32xf32>
    tpu.vector_store %arg9[%c0_24, %c0_25], %32 {strides = array<i32>} : memref<8x32xf32, #tpu.memory_space<vmem>>, vector<8x32xf32>,
    %c1_i32 = arith.constant 1 : i32
    %c8_i32_26 = arith.constant 8 : i32
    %37 = arith.muli %c1_i32, %c8_i32_26 : i32
    %38 = tpu.assume_multiple %37, 8 : i32
    %39 = arith.index_cast %38 : i32 to index
    %c0_27 = arith.constant 0 : index
    %40 = vector.load %arg7[%39, %c0_27] : memref<64x128xf32, #tpu.memory_space<vmem>>, vector<8x128xf32>
    %c0_28 = arith.constant 0 : index
    %c0_29 = arith.constant 0 : index
    %41 = vector.load %arg8[%c0_28, %c0_29] : memref<8x32xf32, #tpu.memory_space<vmem>>, vector<8x32xf32>
    %c0_30 = arith.constant 0 : index
    %c0_31 = arith.constant 0 : index
    %42 = vector.load %arg2[%c0_30, %c0_31] : memref<32x128xf32, #tpu.memory_space<vmem>>, vector<32x128xf32>
    %cst_32 = arith.constant dense<0.000000e+00> : vector<8x128xf32>
    %43 = tpu.matmul %41, %42, %cst_32 {dimension_numbers = #tpu.dot_dimension_numbers<[1], [0], [0], [1], [0, 0, 1, 1], [], []>} : vector<8x32xf32>, vector<32x128xf32>, vector<8x128xf32> -> vector<8x128xf32>
    %44 = arith.addf %40, %43 : vector<8x128xf32>
    %45 = arith.negf %44 : vector<8x128xf32>
    %46 = math.exp %45 : vector<8x128xf32>
    %cst_33 = arith.constant 1.000000e+00 : f32
    %47 = vector.broadcast %cst_33 : f32 to vector<8x128xf32>
    %48 = arith.addf %47, %46 : vector<8x128xf32>
    %49 = arith.divf %47, %48 : vector<8x128xf32>
    %50 = vector.extract_strided_slice %49 {offsets = [0, 0], sizes = [8, 32], strides = [1, 1]} : vector<8x128xf32> to vector<8x32xf32>
    %51 = vector.extract_strided_slice %49 {offsets = [0, 32], sizes = [8, 32], strides = [1, 1]} : vector<8x128xf32> to vector<8x32xf32>
    %52 = vector.extract_strided_slice %49 {offsets = [0, 96], sizes = [8, 32], strides = [1, 1]} : vector<8x128xf32> to vector<8x32xf32>
    %53 = vector.extract_strided_slice %44 {offsets = [0, 64], sizes = [8, 32], strides = [1, 1]} : vector<8x128xf32> to vector<8x32xf32>
    %54 = math.tanh %53 : vector<8x32xf32>
    %c0_34 = arith.constant 0 : index
    %c0_35 = arith.constant 0 : index
    %55 = vector.load %arg9[%c0_34, %c0_35] : memref<8x32xf32, #tpu.memory_space<vmem>>, vector<8x32xf32>
    %56 = arith.mulf %51, %55 : vector<8x32xf32>
    %57 = arith.mulf %50, %54 : vector<8x32xf32>
    %58 = arith.addf %56, %57 : vector<8x32xf32>
    %59 = math.tanh %58 : vector<8x32xf32>
    %60 = arith.mulf %52, %59 : vector<8x32xf32>
    %c0_36 = arith.constant 0 : index
    %c0_37 = arith.constant 0 : index
    %61 = vector.load %arg8[%c0_36, %c0_37] : memref<8x32xf32, #tpu.memory_space<vmem>>, vector<8x32xf32>
    tpu.vector_store %arg8[%c0_36, %c0_37], %60 {strides = array<i32>} : memref<8x32xf32, #tpu.memory_space<vmem>>, vector<8x32xf32>,
    %c0_38 = arith.constant 0 : index
    %c0_39 = arith.constant 0 : index
    %62 = vector.load %arg9[%c0_38, %c0_39] : memref<8x32xf32, #tpu.memory_space<vmem>>, vector<8x32xf32>
    tpu.vector_store %arg9[%c0_38, %c0_39], %58 {strides = array<i32>} : memref<8x32xf32, #tpu.memory_space<vmem>>, vector<8x32xf32>,
    %c2_i32 = arith.constant 2 : i32
    %c8_i32_40 = arith.constant 8 : i32
    %63 = arith.muli %c2_i32, %c8_i32_40 : i32
    %64 = tpu.assume_multiple %63, 8 : i32
    %65 = arith.index_cast %64 : i32 to index
    %c0_41 = arith.constant 0 : index
    %66 = vector.load %arg7[%65, %c0_41] : memref<64x128xf32, #tpu.memory_space<vmem>>, vector<8x128xf32>
    %c0_42 = arith.constant 0 : index
    %c0_43 = arith.constant 0 : index
    %67 = vector.load %arg8[%c0_42, %c0_43] : memref<8x32xf32, #tpu.memory_space<vmem>>, vector<8x32xf32>
    %c0_44 = arith.constant 0 : index
    %c0_45 = arith.constant 0 : index
    %68 = vector.load %arg2[%c0_44, %c0_45] : memref<32x128xf32, #tpu.memory_space<vmem>>, vector<32x128xf32>
    %cst_46 = arith.constant dense<0.000000e+00> : vector<8x128xf32>
    %69 = tpu.matmul %67, %68, %cst_46 {dimension_numbers = #tpu.dot_dimension_numbers<[1], [0], [0], [1], [0, 0, 1, 1], [], []>} : vector<8x32xf32>, vector<32x128xf32>, vector<8x128xf32> -> vector<8x128xf32>
    %70 = arith.addf %66, %69 : vector<8x128xf32>
    %71 = arith.negf %70 : vector<8x128xf32>
    %72 = math.exp %71 : vector<8x128xf32>
    %cst_47 = arith.constant 1.000000e+00 : f32
    %73 = vector.broadcast %cst_47 : f32 to vector<8x128xf32>
    %74 = arith.addf %73, %72 : vector<8x128xf32>
    %75 = arith.divf %73, %74 : vector<8x128xf32>
    %76 = vector.extract_strided_slice %75 {offsets = [0, 0], sizes = [8, 32], strides = [1, 1]} : vector<8x128xf32> to vector<8x32xf32>
    %77 = vector.extract_strided_slice %75 {offsets = [0, 32], sizes = [8, 32], strides = [1, 1]} : vector<8x128xf32> to vector<8x32xf32>
    %78 = vector.extract_strided_slice %75 {offsets = [0, 96], sizes = [8, 32], strides = [1, 1]} : vector<8x128xf32> to vector<8x32xf32>
    %79 = vector.extract_strided_slice %70 {offsets = [0, 64], sizes = [8, 32], strides = [1, 1]} : vector<8x128xf32> to vector<8x32xf32>
    %80 = math.tanh %79 : vector<8x32xf32>
    %c0_48 = arith.constant 0 : index
    %c0_49 = arith.constant 0 : index
    %81 = vector.load %arg9[%c0_48, %c0_49] : memref<8x32xf32, #tpu.memory_space<vmem>>, vector<8x32xf32>
    %82 = arith.mulf %77, %81 : vector<8x32xf32>
    %83 = arith.mulf %76, %80 : vector<8x32xf32>
    %84 = arith.addf %82, %83 : vector<8x32xf32>
    %85 = math.tanh %84 : vector<8x32xf32>
    %86 = arith.mulf %78, %85 : vector<8x32xf32>
    %c0_50 = arith.constant 0 : index
    %c0_51 = arith.constant 0 : index
    %87 = vector.load %arg8[%c0_50, %c0_51] : memref<8x32xf32, #tpu.memory_space<vmem>>, vector<8x32xf32>
    tpu.vector_store %arg8[%c0_50, %c0_51], %86 {strides = array<i32>} : memref<8x32xf32, #tpu.memory_space<vmem>>, vector<8x32xf32>,
    %c0_52 = arith.constant 0 : index
    %c0_53 = arith.constant 0 : index
    %88 = vector.load %arg9[%c0_52, %c0_53] : memref<8x32xf32, #tpu.memory_space<vmem>>, vector<8x32xf32>
    tpu.vector_store %arg9[%c0_52, %c0_53], %84 {strides = array<i32>} : memref<8x32xf32, #tpu.memory_space<vmem>>, vector<8x32xf32>,
    %c3_i32 = arith.constant 3 : i32
    %c8_i32_54 = arith.constant 8 : i32
    %89 = arith.muli %c3_i32, %c8_i32_54 : i32
    %90 = tpu.assume_multiple %89, 8 : i32
    %91 = arith.index_cast %90 : i32 to index
    %c0_55 = arith.constant 0 : index
    %92 = vector.load %arg7[%91, %c0_55] : memref<64x128xf32, #tpu.memory_space<vmem>>, vector<8x128xf32>
    %c0_56 = arith.constant 0 : index
    %c0_57 = arith.constant 0 : index
    %93 = vector.load %arg8[%c0_56, %c0_57] : memref<8x32xf32, #tpu.memory_space<vmem>>, vector<8x32xf32>
    %c0_58 = arith.constant 0 : index
    %c0_59 = arith.constant 0 : index
    %94 = vector.load %arg2[%c0_58, %c0_59] : memref<32x128xf32, #tpu.memory_space<vmem>>, vector<32x128xf32>
    %cst_60 = arith.constant dense<0.000000e+00> : vector<8x128xf32>
    %95 = tpu.matmul %93, %94, %cst_60 {dimension_numbers = #tpu.dot_dimension_numbers<[1], [0], [0], [1], [0, 0, 1, 1], [], []>} : vector<8x32xf32>, vector<32x128xf32>, vector<8x128xf32> -> vector<8x128xf32>
    %96 = arith.addf %92, %95 : vector<8x128xf32>
    %97 = arith.negf %96 : vector<8x128xf32>
    %98 = math.exp %97 : vector<8x128xf32>
    %cst_61 = arith.constant 1.000000e+00 : f32
    %99 = vector.broadcast %cst_61 : f32 to vector<8x128xf32>
    %100 = arith.addf %99, %98 : vector<8x128xf32>
    %101 = arith.divf %99, %100 : vector<8x128xf32>
    %102 = vector.extract_strided_slice %101 {offsets = [0, 0], sizes = [8, 32], strides = [1, 1]} : vector<8x128xf32> to vector<8x32xf32>
    %103 = vector.extract_strided_slice %101 {offsets = [0, 32], sizes = [8, 32], strides = [1, 1]} : vector<8x128xf32> to vector<8x32xf32>
    %104 = vector.extract_strided_slice %101 {offsets = [0, 96], sizes = [8, 32], strides = [1, 1]} : vector<8x128xf32> to vector<8x32xf32>
    %105 = vector.extract_strided_slice %96 {offsets = [0, 64], sizes = [8, 32], strides = [1, 1]} : vector<8x128xf32> to vector<8x32xf32>
    %106 = math.tanh %105 : vector<8x32xf32>
    %c0_62 = arith.constant 0 : index
    %c0_63 = arith.constant 0 : index
    %107 = vector.load %arg9[%c0_62, %c0_63] : memref<8x32xf32, #tpu.memory_space<vmem>>, vector<8x32xf32>
    %108 = arith.mulf %103, %107 : vector<8x32xf32>
    %109 = arith.mulf %102, %106 : vector<8x32xf32>
    %110 = arith.addf %108, %109 : vector<8x32xf32>
    %111 = math.tanh %110 : vector<8x32xf32>
    %112 = arith.mulf %104, %111 : vector<8x32xf32>
    %c0_64 = arith.constant 0 : index
    %c0_65 = arith.constant 0 : index
    %113 = vector.load %arg8[%c0_64, %c0_65] : memref<8x32xf32, #tpu.memory_space<vmem>>, vector<8x32xf32>
    tpu.vector_store %arg8[%c0_64, %c0_65], %112 {strides = array<i32>} : memref<8x32xf32, #tpu.memory_space<vmem>>, vector<8x32xf32>,
    %c0_66 = arith.constant 0 : index
    %c0_67 = arith.constant 0 : index
    %114 = vector.load %arg9[%c0_66, %c0_67] : memref<8x32xf32, #tpu.memory_space<vmem>>, vector<8x32xf32>
    tpu.vector_store %arg9[%c0_66, %c0_67], %110 {strides = array<i32>} : memref<8x32xf32, #tpu.memory_space<vmem>>, vector<8x32xf32>,
    %c4_i32 = arith.constant 4 : i32
    %c8_i32_68 = arith.constant 8 : i32
    %115 = arith.muli %c4_i32, %c8_i32_68 : i32
    %116 = tpu.assume_multiple %115, 8 : i32
    %117 = arith.index_cast %116 : i32 to index
    %c0_69 = arith.constant 0 : index
    %118 = vector.load %arg7[%117, %c0_69] : memref<64x128xf32, #tpu.memory_space<vmem>>, vector<8x128xf32>
    %c0_70 = arith.constant 0 : index
    %c0_71 = arith.constant 0 : index
    %119 = vector.load %arg8[%c0_70, %c0_71] : memref<8x32xf32, #tpu.memory_space<vmem>>, vector<8x32xf32>
    %c0_72 = arith.constant 0 : index
    %c0_73 = arith.constant 0 : index
    %120 = vector.load %arg2[%c0_72, %c0_73] : memref<32x128xf32, #tpu.memory_space<vmem>>, vector<32x128xf32>
    %cst_74 = arith.constant dense<0.000000e+00> : vector<8x128xf32>
    %121 = tpu.matmul %119, %120, %cst_74 {dimension_numbers = #tpu.dot_dimension_numbers<[1], [0], [0], [1], [0, 0, 1, 1], [], []>} : vector<8x32xf32>, vector<32x128xf32>, vector<8x128xf32> -> vector<8x128xf32>
    %122 = arith.addf %118, %121 : vector<8x128xf32>
    %123 = arith.negf %122 : vector<8x128xf32>
    %124 = math.exp %123 : vector<8x128xf32>
    %cst_75 = arith.constant 1.000000e+00 : f32
    %125 = vector.broadcast %cst_75 : f32 to vector<8x128xf32>
    %126 = arith.addf %125, %124 : vector<8x128xf32>
    %127 = arith.divf %125, %126 : vector<8x128xf32>
    %128 = vector.extract_strided_slice %127 {offsets = [0, 0], sizes = [8, 32], strides = [1, 1]} : vector<8x128xf32> to vector<8x32xf32>
    %129 = vector.extract_strided_slice %127 {offsets = [0, 32], sizes = [8, 32], strides = [1, 1]} : vector<8x128xf32> to vector<8x32xf32>
    %130 = vector.extract_strided_slice %127 {offsets = [0, 96], sizes = [8, 32], strides = [1, 1]} : vector<8x128xf32> to vector<8x32xf32>
    %131 = vector.extract_strided_slice %122 {offsets = [0, 64], sizes = [8, 32], strides = [1, 1]} : vector<8x128xf32> to vector<8x32xf32>
    %132 = math.tanh %131 : vector<8x32xf32>
    %c0_76 = arith.constant 0 : index
    %c0_77 = arith.constant 0 : index
    %133 = vector.load %arg9[%c0_76, %c0_77] : memref<8x32xf32, #tpu.memory_space<vmem>>, vector<8x32xf32>
    %134 = arith.mulf %129, %133 : vector<8x32xf32>
    %135 = arith.mulf %128, %132 : vector<8x32xf32>
    %136 = arith.addf %134, %135 : vector<8x32xf32>
    %137 = math.tanh %136 : vector<8x32xf32>
    %138 = arith.mulf %130, %137 : vector<8x32xf32>
    %c0_78 = arith.constant 0 : index
    %c0_79 = arith.constant 0 : index
    %139 = vector.load %arg8[%c0_78, %c0_79] : memref<8x32xf32, #tpu.memory_space<vmem>>, vector<8x32xf32>
    tpu.vector_store %arg8[%c0_78, %c0_79], %138 {strides = array<i32>} : memref<8x32xf32, #tpu.memory_space<vmem>>, vector<8x32xf32>,
    %c0_80 = arith.constant 0 : index
    %c0_81 = arith.constant 0 : index
    %140 = vector.load %arg9[%c0_80, %c0_81] : memref<8x32xf32, #tpu.memory_space<vmem>>, vector<8x32xf32>
    tpu.vector_store %arg9[%c0_80, %c0_81], %136 {strides = array<i32>} : memref<8x32xf32, #tpu.memory_space<vmem>>, vector<8x32xf32>,
    %c5_i32 = arith.constant 5 : i32
    %c8_i32_82 = arith.constant 8 : i32
    %141 = arith.muli %c5_i32, %c8_i32_82 : i32
    %142 = tpu.assume_multiple %141, 8 : i32
    %143 = arith.index_cast %142 : i32 to index
    %c0_83 = arith.constant 0 : index
    %144 = vector.load %arg7[%143, %c0_83] : memref<64x128xf32, #tpu.memory_space<vmem>>, vector<8x128xf32>
    %c0_84 = arith.constant 0 : index
    %c0_85 = arith.constant 0 : index
    %145 = vector.load %arg8[%c0_84, %c0_85] : memref<8x32xf32, #tpu.memory_space<vmem>>, vector<8x32xf32>
    %c0_86 = arith.constant 0 : index
    %c0_87 = arith.constant 0 : index
    %146 = vector.load %arg2[%c0_86, %c0_87] : memref<32x128xf32, #tpu.memory_space<vmem>>, vector<32x128xf32>
    %cst_88 = arith.constant dense<0.000000e+00> : vector<8x128xf32>
    %147 = tpu.matmul %145, %146, %cst_88 {dimension_numbers = #tpu.dot_dimension_numbers<[1], [0], [0], [1], [0, 0, 1, 1], [], []>} : vector<8x32xf32>, vector<32x128xf32>, vector<8x128xf32> -> vector<8x128xf32>
    %148 = arith.addf %144, %147 : vector<8x128xf32>
    %149 = arith.negf %148 : vector<8x128xf32>
    %150 = math.exp %149 : vector<8x128xf32>
    %cst_89 = arith.constant 1.000000e+00 : f32
    %151 = vector.broadcast %cst_89 : f32 to vector<8x128xf32>
    %152 = arith.addf %151, %150 : vector<8x128xf32>
    %153 = arith.divf %151, %152 : vector<8x128xf32>
    %154 = vector.extract_strided_slice %153 {offsets = [0, 0], sizes = [8, 32], strides = [1, 1]} : vector<8x128xf32> to vector<8x32xf32>
    %155 = vector.extract_strided_slice %153 {offsets = [0, 32], sizes = [8, 32], strides = [1, 1]} : vector<8x128xf32> to vector<8x32xf32>
    %156 = vector.extract_strided_slice %153 {offsets = [0, 96], sizes = [8, 32], strides = [1, 1]} : vector<8x128xf32> to vector<8x32xf32>
    %157 = vector.extract_strided_slice %148 {offsets = [0, 64], sizes = [8, 32], strides = [1, 1]} : vector<8x128xf32> to vector<8x32xf32>
    %158 = math.tanh %157 : vector<8x32xf32>
    %c0_90 = arith.constant 0 : index
    %c0_91 = arith.constant 0 : index
    %159 = vector.load %arg9[%c0_90, %c0_91] : memref<8x32xf32, #tpu.memory_space<vmem>>, vector<8x32xf32>
    %160 = arith.mulf %155, %159 : vector<8x32xf32>
    %161 = arith.mulf %154, %158 : vector<8x32xf32>
    %162 = arith.addf %160, %161 : vector<8x32xf32>
    %163 = math.tanh %162 : vector<8x32xf32>
    %164 = arith.mulf %156, %163 : vector<8x32xf32>
    %c0_92 = arith.constant 0 : index
    %c0_93 = arith.constant 0 : index
    %165 = vector.load %arg8[%c0_92, %c0_93] : memref<8x32xf32, #tpu.memory_space<vmem>>, vector<8x32xf32>
    tpu.vector_store %arg8[%c0_92, %c0_93], %164 {strides = array<i32>} : memref<8x32xf32, #tpu.memory_space<vmem>>, vector<8x32xf32>,
    %c0_94 = arith.constant 0 : index
    %c0_95 = arith.constant 0 : index
    %166 = vector.load %arg9[%c0_94, %c0_95] : memref<8x32xf32, #tpu.memory_space<vmem>>, vector<8x32xf32>
    tpu.vector_store %arg9[%c0_94, %c0_95], %162 {strides = array<i32>} : memref<8x32xf32, #tpu.memory_space<vmem>>, vector<8x32xf32>,
    %c6_i32 = arith.constant 6 : i32
    %c8_i32_96 = arith.constant 8 : i32
    %167 = arith.muli %c6_i32, %c8_i32_96 : i32
    %168 = tpu.assume_multiple %167, 8 : i32
    %169 = arith.index_cast %168 : i32 to index
    %c0_97 = arith.constant 0 : index
    %170 = vector.load %arg7[%169, %c0_97] : memref<64x128xf32, #tpu.memory_space<vmem>>, vector<8x128xf32>
    %c0_98 = arith.constant 0 : index
    %c0_99 = arith.constant 0 : index
    %171 = vector.load %arg8[%c0_98, %c0_99] : memref<8x32xf32, #tpu.memory_space<vmem>>, vector<8x32xf32>
    %c0_100 = arith.constant 0 : index
    %c0_101 = arith.constant 0 : index
    %172 = vector.load %arg2[%c0_100, %c0_101] : memref<32x128xf32, #tpu.memory_space<vmem>>, vector<32x128xf32>
    %cst_102 = arith.constant dense<0.000000e+00> : vector<8x128xf32>
    %173 = tpu.matmul %171, %172, %cst_102 {dimension_numbers = #tpu.dot_dimension_numbers<[1], [0], [0], [1], [0, 0, 1, 1], [], []>} : vector<8x32xf32>, vector<32x128xf32>, vector<8x128xf32> -> vector<8x128xf32>
    %174 = arith.addf %170, %173 : vector<8x128xf32>
    %175 = arith.negf %174 : vector<8x128xf32>
    %176 = math.exp %175 : vector<8x128xf32>
    %cst_103 = arith.constant 1.000000e+00 : f32
    %177 = vector.broadcast %cst_103 : f32 to vector<8x128xf32>
    %178 = arith.addf %177, %176 : vector<8x128xf32>
    %179 = arith.divf %177, %178 : vector<8x128xf32>
    %180 = vector.extract_strided_slice %179 {offsets = [0, 0], sizes = [8, 32], strides = [1, 1]} : vector<8x128xf32> to vector<8x32xf32>
    %181 = vector.extract_strided_slice %179 {offsets = [0, 32], sizes = [8, 32], strides = [1, 1]} : vector<8x128xf32> to vector<8x32xf32>
    %182 = vector.extract_strided_slice %179 {offsets = [0, 96], sizes = [8, 32], strides = [1, 1]} : vector<8x128xf32> to vector<8x32xf32>
    %183 = vector.extract_strided_slice %174 {offsets = [0, 64], sizes = [8, 32], strides = [1, 1]} : vector<8x128xf32> to vector<8x32xf32>
    %184 = math.tanh %183 : vector<8x32xf32>
    %c0_104 = arith.constant 0 : index
    %c0_105 = arith.constant 0 : index
    %185 = vector.load %arg9[%c0_104, %c0_105] : memref<8x32xf32, #tpu.memory_space<vmem>>, vector<8x32xf32>
    %186 = arith.mulf %181, %185 : vector<8x32xf32>
    %187 = arith.mulf %180, %184 : vector<8x32xf32>
    %188 = arith.addf %186, %187 : vector<8x32xf32>
    %189 = math.tanh %188 : vector<8x32xf32>
    %190 = arith.mulf %182, %189 : vector<8x32xf32>
    %c0_106 = arith.constant 0 : index
    %c0_107 = arith.constant 0 : index
    %191 = vector.load %arg8[%c0_106, %c0_107] : memref<8x32xf32, #tpu.memory_space<vmem>>, vector<8x32xf32>
    tpu.vector_store %arg8[%c0_106, %c0_107], %190 {strides = array<i32>} : memref<8x32xf32, #tpu.memory_space<vmem>>, vector<8x32xf32>,
    %c0_108 = arith.constant 0 : index
    %c0_109 = arith.constant 0 : index
    %192 = vector.load %arg9[%c0_108, %c0_109] : memref<8x32xf32, #tpu.memory_space<vmem>>, vector<8x32xf32>
    tpu.vector_store %arg9[%c0_108, %c0_109], %188 {strides = array<i32>} : memref<8x32xf32, #tpu.memory_space<vmem>>, vector<8x32xf32>,
    %c7_i32 = arith.constant 7 : i32
    %c8_i32_110 = arith.constant 8 : i32
    %193 = arith.muli %c7_i32, %c8_i32_110 : i32
    %194 = tpu.assume_multiple %193, 8 : i32
    %195 = arith.index_cast %194 : i32 to index
    %c0_111 = arith.constant 0 : index
    %196 = vector.load %arg7[%195, %c0_111] : memref<64x128xf32, #tpu.memory_space<vmem>>, vector<8x128xf32>
    %c0_112 = arith.constant 0 : index
    %c0_113 = arith.constant 0 : index
    %197 = vector.load %arg8[%c0_112, %c0_113] : memref<8x32xf32, #tpu.memory_space<vmem>>, vector<8x32xf32>
    %c0_114 = arith.constant 0 : index
    %c0_115 = arith.constant 0 : index
    %198 = vector.load %arg2[%c0_114, %c0_115] : memref<32x128xf32, #tpu.memory_space<vmem>>, vector<32x128xf32>
    %cst_116 = arith.constant dense<0.000000e+00> : vector<8x128xf32>
    %199 = tpu.matmul %197, %198, %cst_116 {dimension_numbers = #tpu.dot_dimension_numbers<[1], [0], [0], [1], [0, 0, 1, 1], [], []>} : vector<8x32xf32>, vector<32x128xf32>, vector<8x128xf32> -> vector<8x128xf32>
    %200 = arith.addf %196, %199 : vector<8x128xf32>
    %201 = arith.negf %200 : vector<8x128xf32>
    %202 = math.exp %201 : vector<8x128xf32>
    %cst_117 = arith.constant 1.000000e+00 : f32
    %203 = vector.broadcast %cst_117 : f32 to vector<8x128xf32>
    %204 = arith.addf %203, %202 : vector<8x128xf32>
    %205 = arith.divf %203, %204 : vector<8x128xf32>
    %206 = vector.extract_strided_slice %205 {offsets = [0, 0], sizes = [8, 32], strides = [1, 1]} : vector<8x128xf32> to vector<8x32xf32>
    %207 = vector.extract_strided_slice %205 {offsets = [0, 32], sizes = [8, 32], strides = [1, 1]} : vector<8x128xf32> to vector<8x32xf32>
    %208 = vector.extract_strided_slice %205 {offsets = [0, 96], sizes = [8, 32], strides = [1, 1]} : vector<8x128xf32> to vector<8x32xf32>
    %209 = vector.extract_strided_slice %200 {offsets = [0, 64], sizes = [8, 32], strides = [1, 1]} : vector<8x128xf32> to vector<8x32xf32>
    %210 = math.tanh %209 : vector<8x32xf32>
    %c0_118 = arith.constant 0 : index
    %c0_119 = arith.constant 0 : index
    %211 = vector.load %arg9[%c0_118, %c0_119] : memref<8x32xf32, #tpu.memory_space<vmem>>, vector<8x32xf32>
    %212 = arith.mulf %207, %211 : vector<8x32xf32>
    %213 = arith.mulf %206, %210 : vector<8x32xf32>
    %214 = arith.addf %212, %213 : vector<8x32xf32>
    %215 = math.tanh %214 : vector<8x32xf32>
    %216 = arith.mulf %208, %215 : vector<8x32xf32>
    %c0_120 = arith.constant 0 : index
    %c0_121 = arith.constant 0 : index
    %217 = vector.load %arg8[%c0_120, %c0_121] : memref<8x32xf32, #tpu.memory_space<vmem>>, vector<8x32xf32>
    tpu.vector_store %arg8[%c0_120, %c0_121], %216 {strides = array<i32>} : memref<8x32xf32, #tpu.memory_space<vmem>>, vector<8x32xf32>,
    %c0_122 = arith.constant 0 : index
    %c0_123 = arith.constant 0 : index
    %218 = vector.load %arg9[%c0_122, %c0_123] : memref<8x32xf32, #tpu.memory_space<vmem>>, vector<8x32xf32>
    tpu.vector_store %arg9[%c0_122, %c0_123], %214 {strides = array<i32>} : memref<8x32xf32, #tpu.memory_space<vmem>>, vector<8x32xf32>,
    %c8_i32_124 = arith.constant 8 : i32
    %c0_125 = arith.constant 0 : index
    %c0_126 = arith.constant 0 : index
    %219 = vector.load %arg8[%c0_125, %c0_126] : memref<8x32xf32, #tpu.memory_space<vmem>>, vector<8x32xf32>
    %c0_127 = arith.constant 0 : index
    %c0_128 = arith.constant 0 : index
    %220 = vector.load %arg4[%c0_127, %c0_128] : memref<32x8xf32, #tpu.memory_space<vmem>>, vector<32x8xf32>
    %cst_129 = arith.constant dense<0.000000e+00> : vector<8x8xf32>
    %221 = tpu.matmul %219, %220, %cst_129 {dimension_numbers = #tpu.dot_dimension_numbers<[1], [0], [0], [1], [0, 0, 1, 1], [], []>} : vector<8x32xf32>, vector<32x8xf32>, vector<8x8xf32> -> vector<8x8xf32>
    %c0_130 = arith.constant 0 : index
    %c0_131 = arith.constant 0 : index
    %222 = vector.load %arg5[%c0_130, %c0_131] : memref<1x8xf32, #tpu.memory_space<vmem>>, vector<1x8xf32>
    %223 = vector.broadcast %222 : vector<1x8xf32> to vector<8x8xf32>
    %224 = arith.addf %221, %223 : vector<8x8xf32>
    %cst_132 = arith.constant dense<0xFF800000> : vector<8xf32>
    %225 = vector.multi_reduction <maximumf>, %224, %cst_132 [1] : vector<8x8xf32> to vector<8xf32>
    %226 = vector.shape_cast %225 : vector<8xf32> to vector<8x1xf32>
    %227 = vector.broadcast %226 : vector<8x1xf32> to vector<8x8xf32>
    %228 = arith.subf %224, %227 : vector<8x8xf32>
    %229 = math.exp %228 : vector<8x8xf32>
    %cst_133 = arith.constant dense<0.000000e+00> : vector<8xf32>
    %230 = vector.multi_reduction <add>, %229, %cst_133 [1] : vector<8x8xf32> to vector<8xf32>
    %231 = vector.shape_cast %230 : vector<8xf32> to vector<8x1xf32>
    %232 = math.log %231 : vector<8x1xf32>
    %233 = vector.broadcast %232 : vector<8x1xf32> to vector<8x8xf32>
    %234 = arith.subf %228, %233 : vector<8x8xf32>
    %c0_134 = arith.constant 0 : index
    %c0_135 = arith.constant 0 : index
    %235 = vector.load %arg6[%c0_134, %c0_135] : memref<8x8xf32, #tpu.memory_space<vmem>>, vector<8x8xf32>
    tpu.vector_store %arg6[%c0_134, %c0_135], %234 {strides = array<i32>} : memref<8x8xf32, #tpu.memory_space<vmem>>, vector<8x8xf32>,
    return
  }
}

</mosaic_0001>

<bundles_post_ra>
// kernel: tpu_custom_call.1
= control target key start
LH: loop header
LB: loop body
LE: loop exit
PB: predicated region body
PF: predicated region fallthrough
CT: control target
= control target key end

     0   :  { %vm43_vm0 = vcmask 261120   ;;  %v1619_v4 = vmov 0.0|0.0   ;;  %v1620_v8 = vmov 0.0   ;;  %vm1621_vm1 = vmmov 0   ;;  %s1905_s0 = inlined_call_operand.vmem [shape: f32[64,32], index: 0, kind: input, shape index: {}]   ;;  %s1906_s1 = inlined_call_operand.vmem [shape: f32[32,128], index: 1, kind: input, shape index: {}]   ;;  %s1907_s2 = inlined_call_operand.vmem [shape: f32[32,128], index: 2, kind: input, shape index: {}]   ;;  %s1908_s3 = inlined_call_operand.vmem [shape: f32[1,128], index: 3, kind: input, shape index: {}]   ;;  %s1909_s4 = inlined_call_operand.vmem [shape: f32[32,8], index: 4, kind: input, shape index: {}]   ;;  %s1910_s5 = inlined_call_operand.vmem [shape: f32[1,8], index: 5, kind: input, shape index: {}]   ;;  %s1911_s6 = inlined_call_operand.hbm [shape: f32[8,8], index: 6, kind: output, shape index: {}]  }
   0x1   :  { %v32_v0 = vld [vmem:[%s1906_s1] sm:$0xff]  ;;  %v33_v1 = vld [vmem:[%s1906_s1 + $0x8] sm:$0xff]  ;;  %1466 = vmatprep.subr.bf16.mxu1 %v1619_v4  ;;  %v34_v6 = vld [vmem:[%s1906_s1 + $0x10] sm:$0xff]  ;;  %181 = vst.msk [vmem:[#allocation3] sm:$0xff] %vm43_vm0, %v1620_v8  ;;  %1367 = vmatprep.mubr.msk.f32.mxu1 %vm1621_vm1, %v1620_v8 }
   0x2   :  { %v185_v2 = vld [vmem:[%s1907_s2] sm:$0xff]  ;;  %v1458_v3 = vpack.c.bf16 %v33_v1, %v32_v0  ;;  %v186_v5 = vld [vmem:[%s1907_s2 + $0x8] sm:$0xff]  ;;  %v35_v7 = vld [vmem:[%s1906_s1 + $0x18] sm:$0xff]  ;;  %182 = vst.msk [vmem:[#allocation4] sm:$0xff] %vm43_vm0, %v1620_v8 }
   0x3   :  { %v1684_v9 = vpack.c.bf16 %v186_v5, %v185_v2  ;;  %v1462_v10 = vpack.c.bf16 %v35_v7, %v34_v6  ;;  %v24_v11 = vld [vmem:[%s1905_s0] sm:$0xff]  ;;  %v187_v12 = vld [vmem:[%s1907_s2 + $0x10] sm:$0xff]  ;;  %v188_v13 = vld [vmem:[%s1907_s2 + $0x18] sm:$0xff] }
   0x4   :  { %1459 = vmatprep.subr.bf16.mxu0 %v1458_v3  ;;  %1347 = vmatprep.mubr.msk.f32.mxu0 %vm43_vm0, %v24_v11 }
   0x5   :  { %11 = vsyncpa [#allocation6], 0  ;;  %1461 = vmatpush3.bf16.msra.mxu0 %v1458_v3  ;;  %1468 = vmatpush3.bf16.msra.mxu1 %v1684_v9  ;;  %v1699_v14 = vpack.c.bf16 %v188_v13, %v187_v12  ;;  %v25_v15 = vld [vmem:[%s1905_s0 + $0x8] sm:$0xff]  ;;  %v1723_v17 = vld [vmem:[%s1908_s3] ss:$0 sm:$0xff]  ;;  %s1622_s17 = smov 64  }
   0x6   :  { %1463 = vmatprep.subr.bf16.mxu0 %v1462_v10  ;;  %1469 = vmatprep.subr.bf16.mxu1 %v1619_v4  ;;  %s1623_s18 = smov 32   ;;  %s1624_s3 = smov 96   ;;  %v26_v59 = vld [vmem:[%s1905_s0 + $0x10] sm:$0xff]  ;;  %v27_v60 = vld [vmem:[%s1905_s0 + $0x18] sm:$0xff]  ;;  %v28_v61 = vld [vmem:[%s1905_s0 + $0x20] sm:$0xff]  ;;  %vm1227_vm2 = vcmask 64512  }
   0x7   :  { %v29_v62 = vld [vmem:[%s1905_s0 + $0x28] sm:$0xff]  ;;  %v30_v63 = vld [vmem:[%s1905_s0 + $0x30] sm:$0xff]  ;;  %v31_v0 = vld [vmem:[%s1905_s0 + $0x38] sm:$0xff] }
   0x8   :  { %v184_v16 = vld [vmem:[#allocation3] sm:$0xff] }
   0x9   :  { %1465 = vmatpush3.bf16.msra.mxu0 %v1462_v10  ;;  %1471 = vmatpush3.bf16.msra.mxu1 %v1699_v14  ;;  %v270_v25 = vld [vmem:[#allocation4] sm:$0xff] }
   0xa   :  { %1472 = vmatprep.subr.bf16.mxu1 %v1619_v4  ;;  %1478 = vmatprep.subr.bf16.mxu0 %v1619_v4 }
   0xc   :  { %1348 = vmatmul.mubr.msk.f32.vlgmr.msra.gmra.mrb[0].mxu0 %vm43_vm0, %v25_v15  ;;  %1368 = vmatmul.mubr.msk.f32.vlgmr.msra.gmra.mrb[0].mxu1 %vm43_vm0, %v184_v16 }
   0xd   :  { %1474 = vmatpush3.bf16.msra.mxu1 %v1684_v9  ;;  %1378 = vmatprep.mubr.msk.f32.mxu1 %vm1621_vm1, %v1620_v8 }
   0xe   :  { %1475 = vmatprep.subr.bf16.mxu1 %v1619_v4  ;;  %1480 = vmatpush3.bf16.msra.mxu0 %v1684_v9 }
   0xf   :  { %1481 = vmatprep.subr.bf16.mxu0 %v1619_v4  ;;  %1350 = vmatprep.mubr.msk.f32.mxu0 %vm43_vm0, %v26_v59 }
  0x10   :  { %1351 = vmatmul.mubr.msk.f32.gmra.mrb[2].mxu0 %vm43_vm0, %v27_v60 }
  0x11   :  { %1477 = vmatpush3.bf16.msra.mxu1 %v1699_v14  ;;  %1353 = vmatprep.mubr.msk.f32.mxu0 %vm43_vm0, %v28_v61 }
  0x12   :  { %1483 = vmatpush3.bf16.msra.mxu0 %v1699_v14  ;;  %1484 = vmatprep.subr.bf16.mxu1 %v1619_v4 }
  0x13   :  { %1490 = vmatprep.subr.bf16.mxu0 %v1619_v4 }
  0x14   :  { %1354 = vmatmul.mubr.msk.f32.gmra.mrb[4].mxu0 %vm43_vm0, %v29_v62 }
  0x15   :  { %1356 = vmatprep.mubr.msk.f32.mxu0 %vm43_vm0, %v30_v63 }
  0x18   :  { %1357 = vmatmul.mubr.msk.f32.gmra.mrb[6].mxu0 %vm43_vm0, %v31_v0 }
  0x19   :  { %1389 = vmatprep.mubr.msk.f32.mxu0 %vm1621_vm1, %v1620_v8 }
  0xdf   :  { %v1349_v18 = vpop.f32.mrb[0].mxu0  ;;  %v258_v19 = vpop.f32.mrb[0].mxu1 }
  0xe0   :  { %v134_v20 = vpop.f32.mrb[1].mxu0  ;;  %v1369_v21 = vpop.f32.mrb[1].mxu1  ;;  %v140_v43 = vadd.f32 %v1349_v18, %v1723_v17 }
  0xe1   :  { %v135_v22 = vadd.f32 %v1723_v17, %v134_v20 }
  0xe3   :  { %v262_v23 = vadd.f32 %v258_v19, %v135_v22  ;;  %v1352_v6 = vpop.f32.mrb[2].mxu0 }
  0xe4   :  { %v144_v7 = vpop.f32.mrb[3].mxu0 }
  0xe5   :  { %1527 = vtanh.f32 %v262_v23  ;;  %v1265_v26 = vmul.f32 -1.442695, %v262_v23  ;;  %v145_v18 = vadd.f32 %v1723_v17, %v144_v7 }
  0xe7   :  { %1529 = vpow2.f32 %v1265_v26  ;;  %v1776_v10 = vpop.f32.mrb[4].mxu0 }
  0xe8   :  { %v1778_v11 = vpop.f32.mrb[5].mxu0 }
  0xe9   :  { %v155_v62 = vadd.f32 %v1723_v17, %v1778_v11 }
  0xeb   :  { %v1788_v15 = vpop.f32.mrb[6].mxu0 }
  0xec   :  { %v1790_v16 = vpop.f32.mrb[7].mxu0 }
  0xef   :  { %v1528_v24 = vpop.eup %1527 }
  0xf0   :  { %277 = vrot.lane.b32.xlu0 %v1528_v24, %s1622_s17 }
  0xf1   :  { %v1530_v27 = vpop.eup %1529 }
  0xf2   :  { %v266_v28 = vadd.f32 1.0, %v1530_v27 }
  0xf4   :  { %272 = vrot.lane.b32.xlu0 %v270_v25, %s1623_s18  ;;  %1531 = vrcp.f32 %v266_v28 }
  0xfe   :  { %v1532_v29 = vpop.eup %1531 }
 0x162   :  { %v278_v30 = vpop.permute.xlu0 %277 }
 0x163   :  { %v280_v31 = vmul.f32 %v1532_v29, %v278_v30 }
 0x165   :  { %282 = vrot.lane.b32.xlu1 %v280_v31, %s1623_s18 }
 0x166   :  { %v273_v32 = vpop.permute.xlu0 %272 }
 0x167   :  { %v275_v33 = vmul.f32 %v1532_v29, %v273_v32 }
 0x1d7   :  { %v283_v34 = vpop.permute.xlu1 %282 }
 0x1d8   :  { %v285_v35 = vadd.f32 %v283_v34, %v275_v33 }
 0x1da   :  { %1533 = vtanh.f32 %v285_v35 }
 0x1e4   :  { %v1534_v36 = vpop.eup %1533 }
 0x1e5   :  { %288 = vrot.lane.b32.xlu1 %v1534_v36, %s1622_s17 }
 0x1e9   :  { %298 = vrot.lane.b32.xlu1 %v285_v35, %s1624_s3 }
 0x257   :  { %v289_v37 = vpop.permute.xlu1 %288 }
 0x258   :  { %v291_v38 = vmul.f32 %v1532_v29, %v289_v37 }
 0x25a   :  { %293 = vrot.lane.b32.xlu0 %v291_v38, %s1623_s18 }
 0x25b   :  { %v299_v39 = vpop.permute.xlu1 %298 }
 0x25c   :  { %301 = vst.msk [vmem:[#allocation4] sm:$0xff] %vm43_vm0, %v299_v39 }
 0x263   :  { %v390_v40 = vld [vmem:[#allocation4] sm:$0xff] }
 0x264   :  { %392 = vrot.lane.b32.xlu1 %v390_v40, %s1623_s18  ;;  %v150_v40 = vadd.f32 %v1352_v6, %v1723_v17 }
 0x2cc   :  { %v294_v41 = vpop.permute.xlu0 %293 }
 0x2cd   :  { %296 = vst.msk [vmem:[#allocation3] sm:$0xff] %vm43_vm0, %v294_v41 }
 0x2d4   :  { %v304_v42 = vld [vmem:[#allocation3] sm:$0xff] }
 0x2d5   :  { %1379 = vmatmul.mubr.msk.f32.vlgmr.msra.gmra.mrb[2].mxu1 %vm43_vm0, %v304_v42 }
 0x2d6   :  { %1486 = vmatpush3.bf16.msra.mxu1 %v1684_v9  ;;  %1400 = vmatprep.mubr.msk.f32.mxu1 %vm1621_vm1, %v1620_v8  ;;  %v393_v54 = vpop.permute.xlu1 %392 }
 0x2d7   :  { %1487 = vmatprep.subr.bf16.mxu1 %v1619_v4 }
 0x2da   :  { %1489 = vmatpush3.bf16.msra.mxu1 %v1699_v14 }
 0x2db   :  { %1496 = vmatprep.subr.bf16.mxu1 %v1619_v4 }
 0x3a8   :  { %v378_v44 = vpop.f32.mrb[2].mxu1 }
 0x3a9   :  { %v382_v45 = vadd.f32 %v378_v44, %v140_v43  ;;  %v1380_v46 = vpop.f32.mrb[3].mxu1 }
 0x3ab   :  { %1535 = vtanh.f32 %v382_v45  ;;  %v1267_v48 = vmul.f32 -1.442695, %v382_v45 }
 0x3ad   :  { %1537 = vpow2.f32 %v1267_v48 }
 0x3b5   :  { %v1536_v47 = vpop.eup %1535 }
 0x3b6   :  { %397 = vrot.lane.b32.xlu0 %v1536_v47, %s1622_s17 }
 0x3b7   :  { %v1538_v49 = vpop.eup %1537 }
 0x3b8   :  { %v386_v50 = vadd.f32 1.0, %v1538_v49 }
 0x3ba   :  { %1539 = vrcp.f32 %v386_v50 }
 0x3c4   :  { %v1540_v51 = vpop.eup %1539 }
 0x3c5   :  { %v395_v55 = vmul.f32 %v1540_v51, %v393_v54 }
 0x428   :  { %v398_v52 = vpop.permute.xlu0 %397 }
 0x429   :  { %v400_v53 = vmul.f32 %v1540_v51, %v398_v52 }
 0x42b   :  { %402 = vrot.lane.b32.xlu0 %v400_v53, %s1623_s18 }
 0x49d   :  { %v403_v56 = vpop.permute.xlu0 %402 }
 0x49e   :  { %v405_v57 = vadd.f32 %v403_v56, %v395_v55 }
 0x4a0   :  { %1541 = vtanh.f32 %v405_v57 }
 0x4aa   :  { %v1542_v58 = vpop.eup %1541 }
 0x4ab   :  { %408 = vrot.lane.b32.xlu1 %v1542_v58, %s1622_s17 }
 0x4af   :  { %418 = vrot.lane.b32.xlu1 %v405_v57, %s1624_s3 }
 0x51d   :  { %v409_v1 = vpop.permute.xlu1 %408 }
 0x51e   :  { %v411_v2 = vmul.f32 %v1540_v51, %v409_v1 }
 0x520   :  { %413 = vrot.lane.b32.xlu0 %v411_v2, %s1623_s18 }
 0x521   :  { %v419_v3 = vpop.permute.xlu1 %418 }
 0x522   :  { %421 = vst.msk [vmem:[#allocation4] sm:$0xff] %vm43_vm0, %v419_v3 }
 0x529   :  { %v510_v5 = vld [vmem:[#allocation4] sm:$0xff] }
 0x52a   :  { %512 = vrot.lane.b32.xlu1 %v510_v5, %s1623_s18 }
 0x592   :  { %v414_v12 = vpop.permute.xlu0 %413 }
 0x593   :  { %416 = vst.msk [vmem:[#allocation3] sm:$0xff] %vm43_vm0, %v414_v12 }
 0x59a   :  { %v424_v13 = vld [vmem:[#allocation3] sm:$0xff] }
 0x59b   :  { %1390 = vmatmul.mubr.msk.f32.vlgmr.msra.gmra.mrb[8].mxu0 %vm43_vm0, %v424_v13 }
 0x59c   :  { %1492 = vmatpush3.bf16.msra.mxu0 %v1684_v9  ;;  %1411 = vmatprep.mubr.msk.f32.mxu0 %vm1621_vm1, %v1620_v8  ;;  %v513_v29 = vpop.permute.xlu1 %512 }
 0x59d   :  { %1493 = vmatprep.subr.bf16.mxu0 %v1619_v4 }
 0x5a0   :  { %1495 = vmatpush3.bf16.msra.mxu0 %v1699_v14 }
 0x5a1   :  { %1502 = vmatprep.subr.bf16.mxu0 %v1619_v4 }
 0x66e   :  { %v498_v19 = vpop.f32.mrb[8].mxu0 }
 0x66f   :  { %v502_v20 = vadd.f32 %v498_v19, %v145_v18  ;;  %v1391_v21 = vpop.f32.mrb[9].mxu0 }
 0x671   :  { %1543 = vtanh.f32 %v502_v20  ;;  %v1269_v23 = vmul.f32 -1.442695, %v502_v20 }
 0x673   :  { %1545 = vpow2.f32 %v1269_v23 }
 0x67b   :  { %v1544_v22 = vpop.eup %1543 }
 0x67c   :  { %517 = vrot.lane.b32.xlu0 %v1544_v22, %s1622_s17 }
 0x67d   :  { %v1546_v24 = vpop.eup %1545 }
 0x67e   :  { %v506_v25 = vadd.f32 1.0, %v1546_v24 }
 0x680   :  { %1547 = vrcp.f32 %v506_v25 }
 0x68a   :  { %v1548_v26 = vpop.eup %1547 }
 0x68b   :  { %v515_v30 = vmul.f32 %v1548_v26, %v513_v29 }
 0x6ee   :  { %v518_v27 = vpop.permute.xlu0 %517 }
 0x6ef   :  { %v520_v28 = vmul.f32 %v1548_v26, %v518_v27 }
 0x6f1   :  { %522 = vrot.lane.b32.xlu0 %v520_v28, %s1623_s18  ;;  %v160_v28 = vadd.f32 %v1776_v10, %v1723_v17 }
 0x763   :  { %v523_v31 = vpop.permute.xlu0 %522 }
 0x764   :  { %v525_v32 = vadd.f32 %v523_v31, %v515_v30 }
 0x766   :  { %1549 = vtanh.f32 %v525_v32 }
 0x770   :  { %v1550_v33 = vpop.eup %1549 }
 0x771   :  { %528 = vrot.lane.b32.xlu1 %v1550_v33, %s1622_s17 }
 0x775   :  { %538 = vrot.lane.b32.xlu1 %v525_v32, %s1624_s3 }
 0x7e3   :  { %v529_v34 = vpop.permute.xlu1 %528 }
 0x7e4   :  { %v531_v35 = vmul.f32 %v1548_v26, %v529_v34 }
 0x7e6   :  { %533 = vrot.lane.b32.xlu0 %v531_v35, %s1623_s18 }
 0x7e7   :  { %v539_v36 = vpop.permute.xlu1 %538 }
 0x7e8   :  { %541 = vst.msk [vmem:[#allocation4] sm:$0xff] %vm43_vm0, %v539_v36 }
 0x7ef   :  { %v630_v37 = vld [vmem:[#allocation4] sm:$0xff] }
 0x7f0   :  { %632 = vrot.lane.b32.xlu1 %v630_v37, %s1623_s18 }
 0x858   :  { %v534_v38 = vpop.permute.xlu0 %533 }
 0x859   :  { %536 = vst.msk [vmem:[#allocation3] sm:$0xff] %vm43_vm0, %v534_v38 }
 0x860   :  { %v544_v39 = vld [vmem:[#allocation3] sm:$0xff] }
 0x861   :  { %1401 = vmatmul.mubr.msk.f32.vlgmr.msra.gmra.mrb[4].mxu1 %vm43_vm0, %v544_v39 }
 0x862   :  { %1498 = vmatpush3.bf16.msra.mxu1 %v1684_v9  ;;  %1422 = vmatprep.mubr.msk.f32.mxu1 %vm1621_vm1, %v1620_v8  ;;  %v633_v51 = vpop.permute.xlu1 %632 }
 0x863   :  { %1499 = vmatprep.subr.bf16.mxu1 %v1619_v4 }
 0x866   :  { %1501 = vmatpush3.bf16.msra.mxu1 %v1699_v14 }
 0x867   :  { %1508 = vmatprep.subr.bf16.mxu1 %v1619_v4 }
 0x934   :  { %v618_v41 = vpop.f32.mrb[4].mxu1 }
 0x935   :  { %v622_v42 = vadd.f32 %v618_v41, %v150_v40  ;;  %v1402_v43 = vpop.f32.mrb[5].mxu1 }
 0x937   :  { %1551 = vtanh.f32 %v622_v42  ;;  %v1271_v45 = vmul.f32 -1.442695, %v622_v42 }
 0x939   :  { %1553 = vpow2.f32 %v1271_v45 }
 0x941   :  { %v1552_v44 = vpop.eup %1551 }
 0x942   :  { %637 = vrot.lane.b32.xlu0 %v1552_v44, %s1622_s17 }
 0x943   :  { %v1554_v46 = vpop.eup %1553 }
 0x944   :  { %v626_v47 = vadd.f32 1.0, %v1554_v46 }
 0x946   :  { %1555 = vrcp.f32 %v626_v47  ;;  %v165_v47 = vadd.f32 %v1723_v17, %v1790_v16 }
 0x950   :  { %v1556_v48 = vpop.eup %1555 }
 0x951   :  { %v635_v52 = vmul.f32 %v1556_v48, %v633_v51 }
 0x9b4   :  { %v638_v49 = vpop.permute.xlu0 %637 }
 0x9b5   :  { %v640_v50 = vmul.f32 %v1556_v48, %v638_v49 }
 0x9b7   :  { %642 = vrot.lane.b32.xlu0 %v640_v50, %s1623_s18 }
 0xa29   :  { %v643_v53 = vpop.permute.xlu0 %642 }
 0xa2a   :  { %v645_v54 = vadd.f32 %v643_v53, %v635_v52 }
 0xa2c   :  { %1557 = vtanh.f32 %v645_v54 }
 0xa36   :  { %v1558_v55 = vpop.eup %1557 }
 0xa37   :  { %648 = vrot.lane.b32.xlu1 %v1558_v55, %s1622_s17 }
 0xa3b   :  { %658 = vrot.lane.b32.xlu1 %v645_v54, %s1624_s3 }
 0xaa9   :  { %v649_v56 = vpop.permute.xlu1 %648 }
 0xaaa   :  { %v651_v57 = vmul.f32 %v1556_v48, %v649_v56 }
 0xaac   :  { %653 = vrot.lane.b32.xlu0 %v651_v57, %s1623_s18 }
 0xaad   :  { %v659_v58 = vpop.permute.xlu1 %658 }
 0xaae   :  { %661 = vst.msk [vmem:[#allocation4] sm:$0xff] %vm43_vm0, %v659_v58 }
 0xab5   :  { %v750_v59 = vld [vmem:[#allocation4] sm:$0xff] }
 0xab6   :  { %752 = vrot.lane.b32.xlu1 %v750_v59, %s1623_s18 }
 0xb1e   :  { %v654_v60 = vpop.permute.xlu0 %653 }
 0xb1f   :  { %656 = vst.msk [vmem:[#allocation3] sm:$0xff] %vm43_vm0, %v654_v60 }
 0xb26   :  { %v664_v61 = vld [vmem:[#allocation3] sm:$0xff] }
 0xb27   :  { %1412 = vmatmul.mubr.msk.f32.vlgmr.msra.gmra.mrb[10].mxu0 %vm43_vm0, %v664_v61 }
 0xb28   :  { %1504 = vmatpush3.bf16.msra.mxu0 %v1684_v9  ;;  %1433 = vmatprep.mubr.msk.f32.mxu0 %vm1621_vm1, %v1620_v8  ;;  %v753_v18 = vpop.permute.xlu1 %752 }
 0xb29   :  { %1505 = vmatprep.subr.bf16.mxu0 %v1619_v4 }
 0xb2c   :  { %1507 = vmatpush3.bf16.msra.mxu0 %v1699_v14 }
 0xb2d   :  { %1514 = vmatprep.subr.bf16.mxu0 %v1619_v4 }
 0xbfa   :  { %v738_v63 = vpop.f32.mrb[10].mxu0 }
 0xbfb   :  { %v742_v0 = vadd.f32 %v738_v63, %v155_v62  ;;  %v1413_v1 = vpop.f32.mrb[11].mxu0 }
 0xbfd   :  { %1559 = vtanh.f32 %v742_v0  ;;  %v1273_v3 = vmul.f32 -1.442695, %v742_v0 }
 0xbff   :  { %1561 = vpow2.f32 %v1273_v3  ;;  %v170_v3 = vadd.f32 %v1788_v15, %v1723_v17 }
 0xc07   :  { %v1560_v2 = vpop.eup %1559 }
 0xc08   :  { %757 = vrot.lane.b32.xlu0 %v1560_v2, %s1622_s17 }
 0xc09   :  { %v1562_v5 = vpop.eup %1561 }
 0xc0a   :  { %v746_v6 = vadd.f32 1.0, %v1562_v5 }
 0xc0c   :  { %1563 = vrcp.f32 %v746_v6 }
 0xc16   :  { %v1564_v7 = vpop.eup %1563 }
 0xc17   :  { %v755_v19 = vmul.f32 %v1564_v7, %v753_v18 }
 0xc7a   :  { %v758_v12 = vpop.permute.xlu0 %757 }
 0xc7b   :  { %v760_v13 = vmul.f32 %v1564_v7, %v758_v12 }
 0xc7d   :  { %762 = vrot.lane.b32.xlu0 %v760_v13, %s1623_s18 }
 0xcef   :  { %v763_v11 = vpop.permute.xlu0 %762 }
 0xcf0   :  { %v765_v20 = vadd.f32 %v763_v11, %v755_v19 }
 0xcf2   :  { %1565 = vtanh.f32 %v765_v20 }
 0xcfc   :  { %v1566_v21 = vpop.eup %1565 }
 0xcfd   :  { %768 = vrot.lane.b32.xlu1 %v1566_v21, %s1622_s17 }
 0xd01   :  { %778 = vrot.lane.b32.xlu1 %v765_v20, %s1624_s3 }
 0xd6f   :  { %v769_v22 = vpop.permute.xlu1 %768 }
 0xd70   :  { %v771_v23 = vmul.f32 %v1564_v7, %v769_v22 }
 0xd72   :  { %773 = vrot.lane.b32.xlu0 %v771_v23, %s1623_s18 }
 0xd73   :  { %v779_v24 = vpop.permute.xlu1 %778 }
 0xd74   :  { %781 = vst.msk [vmem:[#allocation4] sm:$0xff] %vm43_vm0, %v779_v24 }
 0xd7b   :  { %v870_v25 = vld [vmem:[#allocation4] sm:$0xff] }
 0xd7c   :  { %872 = vrot.lane.b32.xlu1 %v870_v25, %s1623_s18  ;;  %v1143_v25 = vld [vmem:[%s1909_s4] sm:$0xff] }
 0xde4   :  { %v774_v26 = vpop.permute.xlu0 %773 }
 0xde5   :  { %776 = vst.msk [vmem:[#allocation3] sm:$0xff] %vm43_vm0, %v774_v26  ;;  %v1144_v26 = vld [vmem:[%s1909_s4 + $0x8] sm:$0xff] }
 0xdec   :  { %v784_v27 = vld [vmem:[#allocation3] sm:$0xff] }
 0xded   :  { %1423 = vmatmul.mubr.msk.f32.vlgmr.msra.gmra.mrb[6].mxu1 %vm43_vm0, %v784_v27  ;;  %v1515_v27 = vpack.c.bf16 %v1144_v26, %v1143_v25 }
 0xdee   :  { %1510 = vmatpush3.bf16.msra.mxu1 %v1684_v9  ;;  %1444 = vmatprep.mubr.msk.f32.mxu1 %vm1621_vm1, %v1620_v8 }
 0xdef   :  { %1511 = vmatprep.subr.bf16.mxu1 %v1619_v4 }
 0xdf2   :  { %1513 = vmatpush3.bf16.msra.mxu1 %v1699_v14  ;;  %v873_v14 = vpop.permute.xlu1 %872 }
 0xec0   :  { %v858_v29 = vpop.f32.mrb[6].mxu1 }
 0xec1   :  { %v862_v30 = vadd.f32 %v858_v29, %v160_v28  ;;  %v1424_v31 = vpop.f32.mrb[7].mxu1  ;;  %v1145_v28 = vld [vmem:[%s1909_s4 + $0x10] sm:$0xff]  ;;  %v1146_v29 = vld [vmem:[%s1909_s4 + $0x18] sm:$0xff]  ;;  %s1625_s4 = smov [#allocation5]  }
 0xec3   :  { %1567 = vtanh.f32 %v862_v30  ;;  %v1275_v33 = vmul.f32 -1.442695, %v862_v30  ;;  %v1518_v30 = vpack.c.bf16 %v1146_v29, %v1145_v28 }
 0xec5   :  { %1569 = vpow2.f32 %v1275_v33 }
 0xecd   :  { %v1568_v32 = vpop.eup %1567 }
 0xece   :  { %877 = vrot.lane.b32.xlu0 %v1568_v32, %s1622_s17 }
 0xecf   :  { %v1570_v9 = vpop.eup %1569 }
 0xed0   :  { %v866_v34 = vadd.f32 1.0, %v1570_v9 }
 0xed2   :  { %1571 = vrcp.f32 %v866_v34  ;;  %v1280_v34 = vld [vmem:[%s1910_s5] ss:$0 sm:$0xff]  ;;  %s1247_s5 = sshll.u32 %s1625_s4, 4  ;;  %s1248_s5 = int_to_ptr.vmem [resolvable:$true] %s1247_s5 }
 0xed3   :  { %s1595_s14 = scalar_lea.vmem %s1248_s5, 128  ;;  %p1600_p1 = scmp.lt.s32.totalorder %s1248_s5, %s1248_s5 }
 0xed4   :  { %p1596_p0 = scmp.ne.s32.totalorder %s1248_s5, %s1595_s14  ;;  %p1601_p2 = scmp.lt.s32.totalorder %s1595_s14, %s1595_s14 }
 0xed6   :  { %p1602_p3 = por %p1601_p2, %p1600_p1 }
 0xed8   :  { %p1603_p4 = pnand %p1602_p3, %p1596_p0 }
 0xedc   :  { %v1572_v35 = vpop.eup %1571 }
 0xedd   :  { %v875_v38 = vmul.f32 %v1572_v35, %v873_v14 }
 0xf40   :  { %v878_v36 = vpop.permute.xlu0 %877 }
 0xf41   :  { %v880_v37 = vmul.f32 %v1572_v35, %v878_v36 }
 0xf43   :  { %882 = vrot.lane.b32.xlu0 %v880_v37, %s1623_s18 }
 0xfb5   :  { %v883_v10 = vpop.permute.xlu0 %882 }
 0xfb6   :  { %v885_v39 = vadd.f32 %v883_v10, %v875_v38 }
 0xfb8   :  { %1573 = vtanh.f32 %v885_v39 }
 0xfc2   :  { %v1574_v40 = vpop.eup %1573 }
 0xfc3   :  { %888 = vrot.lane.b32.xlu1 %v1574_v40, %s1622_s17 }
 0xfc7   :  { %898 = vrot.lane.b32.xlu1 %v885_v39, %s1624_s3 }
0x1035   :  { %v889_v41 = vpop.permute.xlu1 %888 }
0x1036   :  { %v891_v42 = vmul.f32 %v1572_v35, %v889_v41 }
0x1038   :  { %893 = vrot.lane.b32.xlu0 %v891_v42, %s1623_s18 }
0x1039   :  { %v899_v43 = vpop.permute.xlu1 %898 }
0x103a   :  { %901 = vst.msk [vmem:[#allocation4] sm:$0xff] %vm43_vm0, %v899_v43 }
0x1041   :  { %v990_v44 = vld [vmem:[#allocation4] sm:$0xff] }
0x1042   :  { %992 = vrot.lane.b32.xlu1 %v990_v44, %s1623_s18 }
0x10aa   :  { %v894_v45 = vpop.permute.xlu0 %893 }
0x10ab   :  { %896 = vst.msk [vmem:[#allocation3] sm:$0xff] %vm43_vm0, %v894_v45 }
0x10b2   :  { %v904_v46 = vld [vmem:[#allocation3] sm:$0xff] }
0x10b3   :  { %1434 = vmatmul.mubr.msk.f32.vlgmr.msra.gmra.mrb[12].mxu0 %vm43_vm0, %v904_v46 }
0x10b4   :  { %1455 = vmatprep.mubr.msk.f32.mxu0 %vm1621_vm1, %v1620_v8  ;;  %v993_v8 = vpop.permute.xlu1 %992  ;;  %1516 = vmatpush3.bf16.msra.mxu0 %v1515_v27 }
0x10b5   :  { %1517 = vmatprep.subr.bf16.mxu0 %v1619_v4 }
0x10b8   :  { %1519 = vmatpush3.bf16.msra.mxu0 %v1518_v30 }
0x1186   :  { %v978_v48 = vpop.f32.mrb[12].mxu0 }
0x1187   :  { %v982_v49 = vadd.f32 %v978_v48, %v165_v47  ;;  %v1435_v50 = vpop.f32.mrb[13].mxu0 }
0x1189   :  { %1575 = vtanh.f32 %v982_v49  ;;  %v1277_v52 = vmul.f32 -1.442695, %v982_v49 }
0x118b   :  { %1577 = vpow2.f32 %v1277_v52 }
0x1193   :  { %v1576_v51 = vpop.eup %1575 }
0x1194   :  { %997 = vrot.lane.b32.xlu0 %v1576_v51, %s1622_s17 }
0x1195   :  { %v1578_v53 = vpop.eup %1577 }
0x1196   :  { %v986_v54 = vadd.f32 1.0, %v1578_v53 }
0x1198   :  { %1579 = vrcp.f32 %v986_v54 }
0x11a2   :  { %v1580_v55 = vpop.eup %1579 }
0x11a3   :  { %v995_v58 = vmul.f32 %v1580_v55, %v993_v8 }
0x1206   :  { %v998_v56 = vpop.permute.xlu0 %997 }
0x1207   :  { %v1000_v57 = vmul.f32 %v1580_v55, %v998_v56 }
0x1209   :  { %1002 = vrot.lane.b32.xlu0 %v1000_v57, %s1623_s18 }
0x127b   :  { %v1003_v16 = vpop.permute.xlu0 %1002 }
0x127c   :  { %v1005_v59 = vadd.f32 %v1003_v16, %v995_v58 }
0x127e   :  { %1581 = vtanh.f32 %v1005_v59 }
0x1288   :  { %v1582_v60 = vpop.eup %1581 }
0x1289   :  { %1008 = vrot.lane.b32.xlu1 %v1582_v60, %s1622_s17 }
0x128d   :  { %1018 = vrot.lane.b32.xlu1 %v1005_v59, %s1624_s3 }
0x12fb   :  { %v1009_v61 = vpop.permute.xlu1 %1008 }
0x12fc   :  { %v1011_v62 = vmul.f32 %v1580_v55, %v1009_v61 }
0x12fe   :  { %1013 = vrot.lane.b32.xlu0 %v1011_v62, %s1623_s18 }
0x12ff   :  { %v1019_v63 = vpop.permute.xlu1 %1018 }
0x1300   :  { %1021 = vst.msk [vmem:[#allocation4] sm:$0xff] %vm43_vm0, %v1019_v63 }
0x1307   :  { %v1110_v0 = vld [vmem:[#allocation4] sm:$0xff] }
0x1308   :  { %1112 = vrot.lane.b32.xlu1 %v1110_v0, %s1623_s18 }
0x1370   :  { %v1014_v1 = vpop.permute.xlu0 %1013 }
0x1371   :  { %1016 = vst.msk [vmem:[#allocation3] sm:$0xff] %vm43_vm0, %v1014_v1 }
0x1378   :  { %v1024_v2 = vld [vmem:[#allocation3] sm:$0xff] }
0x1379   :  { %1445 = vmatmul.mubr.msk.f32.vlgmr.msra.gmra.mrb[8].mxu1 %vm43_vm0, %v1024_v2 }
0x137a   :  { %v1113_v22 = vpop.permute.xlu1 %1112 }
0x144c   :  { %v1098_v5 = vpop.f32.mrb[8].mxu1 }
0x144d   :  { %v1102_v6 = vadd.f32 %v1098_v5, %v170_v3  ;;  %v1446_v7 = vpop.f32.mrb[9].mxu1 }
0x144f   :  { %1583 = vtanh.f32 %v1102_v6  ;;  %v1279_v13 = vmul.f32 -1.442695, %v1102_v6 }
0x1451   :  { %1585 = vpow2.f32 %v1279_v13 }
0x1459   :  { %v1584_v12 = vpop.eup %1583 }
0x145a   :  { %1117 = vrot.lane.b32.xlu0 %v1584_v12, %s1622_s17 }
0x145b   :  { %v1586_v18 = vpop.eup %1585 }
0x145c   :  { %v1106_v19 = vadd.f32 1.0, %v1586_v18 }
0x145e   :  { %1587 = vrcp.f32 %v1106_v19 }
0x1468   :  { %v1588_v11 = vpop.eup %1587 }
0x1469   :  { %v1115_v23 = vmul.f32 %v1588_v11, %v1113_v22 }
0x14cc   :  { %v1118_v20 = vpop.permute.xlu0 %1117 }
0x14cd   :  { %v1120_v21 = vmul.f32 %v1588_v11, %v1118_v20 }
0x14cf   :  { %1122 = vrot.lane.b32.xlu0 %v1120_v21, %s1623_s18 }
0x1541   :  { %v1123_v17 = vpop.permute.xlu0 %1122 }
0x1542   :  { %v1125_v15 = vadd.f32 %v1123_v17, %v1115_v23 }
0x1544   :  { %1589 = vtanh.f32 %v1125_v15 }
0x154e   :  { %v1590_v24 = vpop.eup %1589 }
0x154f   :  { %1128 = vrot.lane.b32.xlu1 %v1590_v24, %s1622_s17 }
0x15c1   :  { %v1129_v31 = vpop.permute.xlu1 %1128 }
0x15c2   :  { %v1131_v32 = vmul.f32 %v1588_v11, %v1129_v31 }
0x15c4   :  { %1133 = vrot.lane.b32.xlu0 %v1131_v32, %s1623_s18 }
0x1636   :  { %v1134_v33 = vpop.permute.xlu0 %1133 }
0x1637   :  { %1136 = vst.msk [vmem:[#allocation3] sm:$0xff] %vm43_vm0, %v1134_v33 }
0x163e   :  { %v1142_v9 = vld [vmem:[#allocation3] sm:$0xff] }
0x163f   :  { %1456 = vmatmul.mubr.msk.f32.vlgmr.msra.gmra.mrb[14].mxu0 %vm43_vm0, %v1142_v9 }
0x1712   :  { %v1223_v35 = vpop.f32.mrb[14].mxu0 }
0x1713   :  { %v1224_v36 = vadd.f32 %v1280_v34, %v1223_v35  ;;  %v1457_v37 = vpop.f32.mrb[15].mxu0 }
0x1715   :  { %v1228_v4 = vsel %vm1227_vm2, %v1224_v36, -inf }
0x1716   :  { %1229 = vmax.xlane.f32.xlu1 %v1228_v4 }
0x17a3   :  { %v1230_v14 = vpop.xlane.xlu1 %1229 }
0x17a4   :  { %v1231_v38 = vsub.f32 %v1224_v36, %v1230_v14 }
0x17a6   :  { %v1232_v10 = vmul.f32 1.442695, %v1231_v38 }
0x17a8   :  { %1591 = vpow2.f32 %v1232_v10 }
0x17b2   :  { %v1592_v39 = vpop.eup %1591 }
0x17b3   :  { %v1234_v40 = vsel %vm1227_vm2, %v1592_v39, 0.0 }
0x17b4   :  { %1235 = vadd.xlane.f32.xlu0 %v1234_v40 }
0x17ca   :  { %1138 = vrot.lane.b32.xlu0 %v1125_v15, %s1624_s3 }
0x1841   :  { %v1236_v41 = vpop.xlane.xlu0 %1235 }
0x1842   :  { %1593 = vlog2.f32 %v1236_v41 }
0x1845   :  { %v1139_v42 = vpop.permute.xlu0 %1138 }
0x1846   :  { %1141 = vst.msk [vmem:[#allocation4] sm:$0xff] %vm43_vm0, %v1139_v42 }
0x184c   :  { %v1594_v43 = vpop.eup %1593 }
0x184d   :  { %v1238_v44 = vmul.f32 0.6931472, %v1594_v43 }
0x184f   :  { %v1239_v45 = vsub.f32 %v1231_v38, %v1238_v44 }
0x1851   :  { %1240 = vst.msk [vmem:[#allocation5] sm:$0xff] %vm1227_vm2, %v1239_v45 }
0x1852   :  { %1606 = shalt.err (!%p1603_p4)
}
0x1853   :  { %s1607_s17 = scalar_lea.hbm %s1911_s6, 128 }
0x1854   :  { %p1608_p5 = scmp.ne.s32.totalorder %s1911_s6, %s1607_s17  ;;  %p1611_p6 = scmp.lt.u32.totalorder %s1607_s17, %s1911_s6 }
0x1856   :  { %p1613_p7 = pnand %p1611_p6, %p1608_p5 }
0x1858   :  { %1616 = shalt.err (!%p1613_p7)
}
0x1859   :  { %1250 = dma.vmem_to_hbm [thread:$0]  %s1248_s5, 128, %s1911_s6, [#allocation6]  }
0x185a   :  { %1617 = dma.done.wait [#allocation6], 128  }
0x185b   :  { %1618 = vsyncadd [#allocation6], 4294967168 }
0x185c   :  { %1254 = vsyncpa [#allocation6], 1 }

</bundles_post_ra>
